<compile_context>
chip_gen: v5e
topology: v5e:2x2
jax: 0.10.0
libtpu: 0.0.40
codegen_flags: <defaults>
</compile_context>

<pallas_src>
import functools

import jax
import jax.numpy as jnp
from jax.experimental import pallas as pl
from jax.experimental.pallas import tpu as pltpu

EPS = 1e-5


# ---------------------------------------------------------------------------
# In-kernel helpers (traced inside the Pallas kernel bodies)
# ---------------------------------------------------------------------------
def _conv_taps(x, w_flat, l_valid, compute_dtype):
    """Stride-1 'same' 1-D conv of one sample.

    x:      (Cin, Lp) f32 tile, sequence on lanes.
    w_flat: (Cout, K*Cin) tap-major flattened weights (index = k*Cin + c).
    Returns (Cout, Lp) f32 with columns >= l_valid forced to zero.
    """
    cin, lp = x.shape
    cout, kc = w_flat.shape
    k = kc // cin
    pad = (k - 1) // 2

    xc = x.astype(compute_dtype)
    lane = jax.lax.broadcasted_iota(jnp.int32, (1, lp), 1)

    shifted = []
    for tap in range(k):                      # K is small & static
        off = tap - pad                       # shifted[l] = x[l + off]
        if off == 0:
            xs = xc
        else:
            xs = pltpu.roll(xc, shift=(-off) % lp, axis=1)   # XLU lane rotate
            if off < 0:                       # wrapped columns l < -off -> 0
                xs = jnp.where(lane < -off, jnp.zeros_like(xs), xs)
            else:                             # wrapped columns l >= Lp-off -> 0
                xs = jnp.where(lane >= lp - off, jnp.zeros_like(xs), xs)
        shifted.append(xs)
    xcat = jnp.concatenate(shifted, axis=0)   # (K*Cin, Lp) im2col, in vregs

    y = jnp.dot(w_flat.astype(compute_dtype), xcat,
                preferred_element_type=jnp.float32)          # single MXU matmul
    # Zero the padded tail so it never contaminates BN stats or the next conv.
    return jnp.where(lane < l_valid, y, 0.0)


def _channel_stats(y):
    """(Cout, Lp) f32 -> (Cout, 2) per-channel [sum, sum of squares]."""
    return jnp.concatenate(
        [jnp.sum(y, axis=1, keepdims=True),
         jnp.sum(y * y, axis=1, keepdims=True)], axis=1)


# ---------------------------------------------------------------------------
# Kernels
# ---------------------------------------------------------------------------
def _conv_stats_kernel(x_ref, w_ref, y_ref, st_ref, *, l_valid, compute_dtype):
    y = _conv_taps(x_ref[...].astype(jnp.float32), w_ref[...],
                   l_valid, compute_dtype)
    y_ref[...] = y
    st_ref[...] = _channel_stats(y)


def _bn_relu_conv_stats_kernel(y1_ref, s_ref, t_ref, w_ref, y2_ref, st_ref, *,
                               l_valid, compute_dtype):
    # Folded BN1 + ReLU applied as the conv1-result's epilogue (still in vregs).
    h = jnp.maximum(s_ref[...] * y1_ref[...] + t_ref[...], 0.0)   # (C, Lp) f32
    lane = jax.lax.broadcasted_iota(jnp.int32, (1, h.shape[1]), 1)
    h = jnp.where(lane < l_valid, h, 0.0)     # padded tail must stay exactly 0
    y2 = _conv_taps(h, w_ref[...], l_valid, compute_dtype)
    y2_ref[...] = y2
    st_ref[...] = _channel_stats(y2)


def _bn_add_relu_kernel(y2_ref, x_ref, s_ref, t_ref, o_ref):
    o_ref[...] = jnp.maximum(
        s_ref[...] * y2_ref[...] + t_ref[...] + x_ref[...].astype(jnp.float32),
        0.0)


# ---------------------------------------------------------------------------
# Wrapper
# ---------------------------------------------------------------------------
def basic_block_1d(x, w1, g1, b1, w2, g2, b2, *,
                   compute_dtype=jnp.float32, eps=EPS, vmem_limit_bytes=None):
    """BasicBlock1d forward (stride=1, downsample=None).

    x: (B, C, L) f32;  w1: (C, C, K1), w2: (C, C, K2);  g*/b*: (C,) BN affine.
    """
    B, cin, L = x.shape
    cout, _, k1 = w1.shape
    k2 = w2.shape[-1]
    assert cin == cout, "downsample=None path requires inplanes == planes"

    # Lane-align the sequence axis so every vld/vst is an unmasked full vreg.
    lp = max(128, -(-L // 128) * 128)
    xp = jnp.pad(x, ((0, 0), (0, 0), (0, lp - L))) if lp != L else x
    xp = xp.astype(jnp.float32)

    # Tap-major flattened conv weights: w_flat[o, k*Cin + c] = w[o, c, k].
    w1f = jnp.transpose(w1, (0, 2, 1)).reshape(cout, k1 * cin).astype(jnp.float32)
    w2f = jnp.transpose(w2, (0, 2, 1)).reshape(cout, k2 * cout).astype(jnp.float32)

    n = B * L  # elements per channel seen by training-mode BatchNorm

    def fold_bn(stats, gamma, beta):
        tot = jnp.sum(stats, axis=0)                 # (C, 2) — tiny XLA reduce
        mean = tot[:, 0] / n
        var = tot[:, 1] / n - mean * mean            # biased variance
        scale = gamma.astype(jnp.float32) * jax.lax.rsqrt(var + eps)
        shift = beta.astype(jnp.float32) - mean * scale
        return scale.reshape(cout, 1), shift.reshape(cout, 1)

    grid = (B,)
    act_spec = pl.BlockSpec((None, cin, lp), lambda b: (b, 0, 0))
    out_act_spec = pl.BlockSpec((None, cout, lp), lambda b: (b, 0, 0))
    st_spec = pl.BlockSpec((None, cout, 2), lambda b: (b, 0, 0))
    vec_spec = pl.BlockSpec((cout, 1), lambda b: (0, 0))
    cparams = pltpu.CompilerParams(dimension_semantics=("parallel",),
                                   vmem_limit_bytes=vmem_limit_bytes)

    def conv_cost(kk):
        return pl.CostEstimate(
            flops=2 * B * cout * cin * kk * lp,
            transcendentals=0,
            bytes_accessed=4 * (2 * B * cin * lp + cout * cin * kk + B * cout * 2))

    # ---- pass 1: y1 = conv1(x), partial BN1 statistics ---------------------
    y1, st1 = pl.pallas_call(
        functools.partial(_conv_stats_kernel, l_valid=L,
                          compute_dtype=compute_dtype),
        grid=grid,
        in_specs=[act_spec, pl.BlockSpec((cout, k1 * cin), lambda b: (0, 0))],
        out_specs=[out_act_spec, st_spec],
        out_shape=[jax.ShapeDtypeStruct((B, cout, lp), jnp.float32),
                   jax.ShapeDtypeStruct((B, cout, 2), jnp.float32)],
        compiler_params=cparams,
        cost_estimate=conv_cost(k1),
    )(xp, w1f)
    s1, t1 = fold_bn(st1, g1, b1)

    # ---- pass 2: y2 = conv2(relu(bn1(y1))), partial BN2 statistics ---------
    y2, st2 = pl.pallas_call(
        functools.partial(_bn_relu_conv_stats_kernel, l_valid=L,
                          compute_dtype=compute_dtype),
        grid=grid,
        in_specs=[out_act_spec, vec_spec, vec_spec,
                  pl.BlockSpec((cout, k2 * cout), lambda b: (0, 0))],
        out_specs=[out_act_spec, st_spec],
        out_shape=[jax.ShapeDtypeStruct((B, cout, lp), jnp.float32),
                   jax.ShapeDtypeStruct((B, cout, 2), jnp.float32)],
        compiler_params=cparams,
        cost_estimate=conv_cost(k2),
    )(y1, s1, t1, w2f)
    s2, t2 = fold_bn(st2, g2, b2)

    # ---- pass 3: out = relu(bn2(y2) + x) ------------------------------------
    out = pl.pallas_call(
        _bn_add_relu_kernel,
        grid=grid,
        in_specs=[out_act_spec, act_spec, vec_spec, vec_spec],
        out_specs=out_act_spec,
        out_shape=jax.ShapeDtypeStruct((B, cout, lp), jnp.float32),
        compiler_params=cparams,
    )(y2, xp, s2, t2)

    return out[:, :, :L]


# ---------------------------------------------------------------------------
# Pure-JAX reference
# ---------------------------------------------------------------------------
def basic_block_ref(x, w1, g1, b1, w2, g2, b2):
    def conv1d(xx, ww):
        pad = (ww.shape[-1] - 1) // 2
        return jax.lax.conv_general_dilated(
            xx, ww, window_strides=(1,), padding=[(pad, pad)],
            dimension_numbers=('NCH', 'OIH', 'NCH'))

    def bn(xx, g, b):
        mean = jnp.mean(xx, axis=(0, 2), keepdims=True)
        var = jnp.mean((xx - mean) ** 2, axis=(0, 2), keepdims=True)
        return ((xx - mean) * jax.lax.rsqrt(var + EPS)
                * g.reshape(1, -1, 1) + b.reshape(1, -1, 1))

    out = jnp.maximum(bn(conv1d(x, w1), g1, b1), 0.0)
    out = bn(conv1d(out, w2), g2, b2) + x
    return jnp.maximum(out, 0.0)


if __name__ == "__main__":
    def run_case(key, B, C, L, K):
        ks = jax.random.split(key, 7)
        x = jax.random.normal(ks[0], (B, C, L), dtype=jnp.float32)
        w1 = 0.2 * jax.random.normal(ks[1], (C, C, K), dtype=jnp.float32)
        w2 = 0.2 * jax.random.normal(ks[2], (C, C, K), dtype=jnp.float32)
        g1 = 1.0 + 0.1 * jax.random.normal(ks[3], (C,), dtype=jnp.float32)
        b1 = 0.1 * jax.random.normal(ks[4], (C,), dtype=jnp.float32)
        g2 = 1.0 + 0.1 * jax.random.normal(ks[5], (C,), dtype=jnp.float32)
        b2 = 0.1 * jax.random.normal(ks[6], (C,), dtype=jnp.float32)

        ref = jax.block_until_ready(basic_block_ref(x, w1, g1, b1, w2, g2, b2))

        # f32 MXU path (tight check).
        out = jax.block_until_ready(basic_block_1d(x, w1, g1, b1, w2, g2, b2))
        assert out.shape == (B, C, L)
        assert jnp.allclose(out, ref, atol=1e-3, rtol=1e-3), (
            f"f32 max abs err = {float(jnp.max(jnp.abs(out - ref)))}")

        # bf16 MXU path (recommended on v6e/v7x); acc + BN stats stay f32.
        out_bf = jax.block_until_ready(
            basic_block_1d(x, w1, g1, b1, w2, g2, b2,
                           compute_dtype=jnp.bfloat16))
        assert jnp.allclose(out_bf, ref, atol=1e-1, rtol=1e-1), (
            f"bf16 max abs err = {float(jnp.max(jnp.abs(out_bf - ref)))}")

    key = jax.random.PRNGKey(0)
    case_key1, case_key2 = jax.random.split(key)
    # Small shape consistent with BasicBlock1d(4, 4, kernel_size=[3, 3]).
    run_case(case_key1, B=2, C=4, L=16, K=3)
    # Second shape exercising lane padding (200 -> 256) and 8-aligned channels.
    run_case(case_key2, B=3, C=8, L=200, K=3)

    print("KERNEL_OK")
</pallas_src>

<mosaic_0001>
module attributes {stable_mosaic.version = 11 : i64} {
  func.func @_conv_stats_kernel(%arg0: i32, %arg1: memref<1x4x128xf32, #tpu.memory_space<vmem>>, %arg2: memref<4x12xf32, #tpu.memory_space<vmem>>, %arg3: memref<1x4x128xf32, #tpu.memory_space<vmem>>, %arg4: memref<1x4x2xf32, #tpu.memory_space<vmem>>) attributes {dimension_semantics = [#tpu.dimension_semantics<parallel>], iteration_bounds = array<i64: 2>, scalar_prefetch = 0 : i64, scratch_operands = 0 : i64, tpu.core_type = #tpu.core_type<tc>, window_params = [{transform_indices = @transform_0, window_bounds = array<i64: 1, 4, 128>}, {pipeline_mode = #tpu.pipeline_mode<synchronous>, transform_indices = @transform_1, window_bounds = array<i64: 4, 12>}, {transform_indices = @transform_2, window_bounds = array<i64: 1, 4, 128>}, {transform_indices = @transform_3, window_bounds = array<i64: 1, 4, 2>}]} {
    %c0 = arith.constant 0 : index
    %c0_0 = arith.constant 0 : index
    %c0_1 = arith.constant 0 : index
    %0 = vector.load %arg1[%c0, %c0_0, %c0_1] : memref<1x4x128xf32, #tpu.memory_space<vmem>>, vector<1x4x128xf32>
    %1 = vector.shape_cast %0 : vector<1x4x128xf32> to vector<4x128xf32>
    %c0_2 = arith.constant 0 : index
    %c0_3 = arith.constant 0 : index
    %2 = vector.load %arg2[%c0_2, %c0_3] : memref<4x12xf32, #tpu.memory_space<vmem>>, vector<4x12xf32>
    %3 = tpu.iota {dimensions = array<i32: 1>} : vector<1x128xi32>
    %c1_i32 = arith.constant 1 : i32
    %4 = tpu.dynamic_rotate %1 by %c1_i32 dim 1 : vector<4x128xf32>, i32 -> vector<4x128xf32>
    %c1_i32_4 = arith.constant 1 : i32
    %5 = vector.broadcast %c1_i32_4 : i32 to vector<1x128xi32>
    %6 = arith.cmpi slt, %3, %5 : vector<1x128xi32>
    %cst = arith.constant 0.000000e+00 : f32
    %7 = vector.broadcast %cst : f32 to vector<4x128xf32>
    %8 = vector.shape_cast %6 : vector<1x128xi1> to vector<1x128xi1>
    %9 = vector.broadcast %8 : vector<1x128xi1> to vector<4x128xi1>
    %10 = arith.select %9, %7, %4 : vector<4x128xi1>, vector<4x128xf32>
    %c127_i32 = arith.constant 127 : i32
    %11 = tpu.dynamic_rotate %1 by %c127_i32 dim 1 : vector<4x128xf32>, i32 -> vector<4x128xf32>
    %c127_i32_5 = arith.constant 127 : i32
    %12 = vector.broadcast %c127_i32_5 : i32 to vector<1x128xi32>
    %13 = arith.cmpi sge, %3, %12 : vector<1x128xi32>
    %cst_6 = arith.constant 0.000000e+00 : f32
    %14 = vector.broadcast %cst_6 : f32 to vector<4x128xf32>
    %15 = vector.shape_cast %13 : vector<1x128xi1> to vector<1x128xi1>
    %16 = vector.broadcast %15 : vector<1x128xi1> to vector<4x128xi1>
    %17 = arith.select %16, %14, %11 : vector<4x128xi1>, vector<4x128xf32>
    %18 = tpu.concatenate %10, %1, %17 in 0 : vector<4x128xf32>, vector<4x128xf32>, vector<4x128xf32> -> vector<12x128xf32>
    %cst_7 = arith.constant dense<0.000000e+00> : vector<4x128xf32>
    %19 = tpu.matmul %2, %18, %cst_7 {dimension_numbers = #tpu.dot_dimension_numbers<[1], [0], [0], [1], [0, 0, 1, 1], [], []>} : vector<4x12xf32>, vector<12x128xf32>, vector<4x128xf32> -> vector<4x128xf32>
    %c16_i32 = arith.constant 16 : i32
    %20 = vector.broadcast %c16_i32 : i32 to vector<1x128xi32>
    %21 = arith.cmpi slt, %3, %20 : vector<1x128xi32>
    %cst_8 = arith.constant 0.000000e+00 : f32
    %22 = vector.shape_cast %21 : vector<1x128xi1> to vector<1x128xi1>
    %23 = vector.broadcast %22 : vector<1x128xi1> to vector<4x128xi1>
    %24 = vector.broadcast %cst_8 : f32 to vector<4x128xf32>
    %25 = arith.select %23, %19, %24 : vector<4x128xi1>, vector<4x128xf32>
    %c0_9 = arith.constant 0 : index
    %c0_10 = arith.constant 0 : index
    %c0_11 = arith.constant 0 : index
    %26 = vector.load %arg3[%c0_9, %c0_10, %c0_11] : memref<1x4x128xf32, #tpu.memory_space<vmem>>, vector<1x4x128xf32>
    %27 = vector.shape_cast %26 : vector<1x4x128xf32> to vector<4x128xf32>
    %28 = vector.shape_cast %25 : vector<4x128xf32> to vector<1x4x128xf32>
    tpu.vector_store %arg3[%c0_9, %c0_10, %c0_11], %28 {strides = array<i32>} : memref<1x4x128xf32, #tpu.memory_space<vmem>>, vector<1x4x128xf32>,
    %cst_12 = arith.constant dense<0.000000e+00> : vector<4xf32>
    %29 = vector.multi_reduction <add>, %25, %cst_12 [1] : vector<4x128xf32> to vector<4xf32>
    %30 = vector.shape_cast %29 : vector<4xf32> to vector<4x1xf32>
    %31 = arith.mulf %25, %25 : vector<4x128xf32>
    %cst_13 = arith.constant dense<0.000000e+00> : vector<4xf32>
    %32 = vector.multi_reduction <add>, %31, %cst_13 [1] : vector<4x128xf32> to vector<4xf32>
    %33 = vector.shape_cast %32 : vector<4xf32> to vector<4x1xf32>
    %34 = tpu.concatenate %30, %33 in 1 : vector<4x1xf32>, vector<4x1xf32> -> vector<4x2xf32>
    %c0_14 = arith.constant 0 : index
    %c0_15 = arith.constant 0 : index
    %c0_16 = arith.constant 0 : index
    %35 = vector.load %arg4[%c0_14, %c0_15, %c0_16] : memref<1x4x2xf32, #tpu.memory_space<vmem>>, vector<1x4x2xf32>
    %36 = vector.shape_cast %35 : vector<1x4x2xf32> to vector<4x2xf32>
    %37 = vector.shape_cast %34 : vector<4x2xf32> to vector<1x4x2xf32>
    tpu.vector_store %arg4[%c0_14, %c0_15, %c0_16], %37 {strides = array<i32>} : memref<1x4x2xf32, #tpu.memory_space<vmem>>, vector<1x4x2xf32>,
    return
  }
  func.func @transform_0(%arg0: i32) -> (i32, i32, i32) {
    %c0_i32 = arith.constant 0 : i32
    %c0_i32_0 = arith.constant 0 : i32
    %c0_i32_1 = arith.constant 0 : i32
    return %arg0, %c0_i32, %c0_i32_0 : i32, i32, i32
  }
  func.func @transform_1(%arg0: i32) -> (i32, i32) {
    %c0_i32 = arith.constant 0 : i32
    %c0_i32_0 = arith.constant 0 : i32
    %c0_i32_1 = arith.constant 0 : i32
    return %c0_i32, %c0_i32_0 : i32, i32
  }
  func.func @transform_2(%arg0: i32) -> (i32, i32, i32) {
    %c0_i32 = arith.constant 0 : i32
    %c0_i32_0 = arith.constant 0 : i32
    %c0_i32_1 = arith.constant 0 : i32
    return %arg0, %c0_i32, %c0_i32_0 : i32, i32, i32
  }
  func.func @transform_3(%arg0: i32) -> (i32, i32, i32) {
    %c0_i32 = arith.constant 0 : i32
    %c0_i32_0 = arith.constant 0 : i32
    %c0_i32_1 = arith.constant 0 : i32
    return %arg0, %c0_i32, %c0_i32_0 : i32, i32, i32
  }
}

</mosaic_0001>

<bundles_post_ra>
// kernel: tpu_custom_call.1
= control target key start
LH: loop header
LB: loop body
LE: loop exit
PB: predicated region body
PF: predicated region fallthrough
CT: control target
= control target key end

     0   :  { %9 = vsyncpa [#allocation3], 0  ;;  %s787_s0 = inlined_call_operand.hbm [shape: f32[2,4,128], index: 0, kind: input, shape index: {}]   ;;  %s788_s1 = inlined_call_operand.hbm [shape: f32[4,12], index: 1, kind: input, shape index: {}]   ;;  %s789_s2 = inlined_call_operand.hbm [shape: f32[2,4,128], index: 2, kind: output, shape index: {0}]   ;;  %s790_s3 = inlined_call_operand.vmem [shape: f32[2,4,2], index: 3, kind: output, shape index: {1}]  }
   0x1   :  { %11 = vsyncpa [#allocation3 + $0x1], 0 }
   0x2   :  { %12 = vsyncpa [#allocation6], 0 }
   0x3   :  { %13 = vsyncpa [#allocation4], 0 }
   0x4   :  { %15 = vsyncpa [#allocation4 + $0x1], 0  ;;  %s636_s12 = smov 0   ;;  %s638_s13 = smov 0  }
   0x5   :  { %s640_s14 = smov 0   ;;  %s642_s15 = smov 0  }
   0x6 LB: > { %s657_s16 = sadd.s32 4294967295, %s611_s15   ;;  %s405_s17 = sadd.s32 4294967294, %s611_s15   ;;  %s611_s15 = sphi %s642_s15, %s800_s15   ;;  %s607_s14 = sphi %s640_s14, %s799_s14   ;;  %s603_s13 = sphi %s638_s13, %s798_s13   ;;  %s599_s12 = sphi %s636_s12, %s797_s12  }
   0x7   : > { %p41_p0 = scmp.ne.s32.totalorder %s603_s13, %s599_s12  ;;  %p42_p1 = scmp.eq.s32.totalorder %s657_s16, 0 }
   0x8   : > { %p86_p2 = scmp.eq.s32.totalorder %s657_s16, 1  ;;  %p92_p3 = scmp.eq.s32.totalorder %s405_s17, 1 }
   0x9   : > { %p666_p4 = por %p42_p1, %p41_p0  ;;  %p406_p5 = scmp.ge.s32.totalorder %s611_s15, 1 }
   0xa   : > { %p671_p6 = por %p92_p3, %p41_p0  ;;  %p125_p7 = scmp.lt.s32.totalorder %s611_s15, 3 }
   0xb   : > { %s137_s22 = sshll.u32 %s788_s1, 4  ;;  %s613_s24 = smov [#allocation5]   ;;  %s138_s22 = int_to_ptr.hbm [resolvable:$true] %s137_s22 }
   0xc   : > { %p679_p8 = pnand %p406_p5, %p125_p7  ;;  %s139_s25 = sshll.u32 %s613_s24, 4  ;;  %s140_s25 = int_to_ptr.vmem [resolvable:$true] %s139_s25 }
   0xd   : > { %s689_s26 = sadd.s32 1, %s611_s15   ;;  %s28_s27 = sadd.s32 1, %s607_s14 }
   0xe   : > { %p430_p10 = pneg %p679_p8  ;;  %s25_s28 = ssub.s32 %s611_s15, %s689_s26 }
   0xf   : > { %p26_p12 = scmp.eq.s32.totalorder %s25_s28, 0  ;;  %p35_p13 = scmp.ne.s32.totalorder %s607_s14, %s603_s13 }
  0x10   : > { %p431_p11 = pnand %p430_p10, %p42_p1  ;;  %p36_p0 = scmp.eq.s32.totalorder %s611_s15, 0 }
  0x11   : > { %s698_s29 = scalar_select %p26_p12, %s607_s14, %s28_s27  }
  0x12   : > { %433 = dma.hbm_to_vmem [thread:$0]  (!%p431_p11), %s138_s22, 64, %s140_s25, [#allocation6]  }
  0x13   : > { %p702_p3 = por %p86_p2, %p35_p13  ;;  %p443_p5 = scmp.lt.s32.totalorder %s611_s15, 2 }
  0x14   : > { %s150_s4 = sand.u32 1, %s607_s14   ;;  %s410_s5 = sshll.u32 %s611_s15, 2 }
  0x15   : > { %p37_p7 = por %p36_p0, %p35_p13  ;;  %s409_s6 = sshll.u32 %s150_s4, 2 }
  0x16   : > { %s158_s9 = scalar_lea.hbm %s787_s0, %s410_s5  ;;  %s154_s11 = scalar_lea.vmem [#allocation2], %s409_s6 }
  0x17   : > { %s160_s10 = sshll.u32 %s158_s9, 4  ;;  %s162_s17 = sshll.u32 %s154_s11, 4  ;;  %s161_s10 = int_to_ptr.hbm [resolvable:$true] %s160_s10  ;;  %s163_s17 = int_to_ptr.vmem [resolvable:$true] %s162_s17 }
  0x18   : > { %p712_p10 = pnand %p443_p5, %p37_p7  ;;  %s151_s21 = scalar_lea.sflag [#allocation3], %s150_s4 }
  0x19   : > { %s511_s22 = sshra.s32 %s161_s10, 4  ;;  %s518_s28 = scalar_lea.hbm %s787_s0, 8  ;;  %s512_s22 = int_to_ptr.hbm [resolvable:$true] %s511_s22 }
  0x1a   : > { %s513_s24 = scalar_lea.hbm %s512_s22, 4  ;;  %p515_p11 = pneg %p712_p10 }
  0x1b   : > { %p514_p2 = scmp.ne.s32.totalorder %s512_s22, %s513_s24  ;;  %p519_p0 = scmp.lt.s32.totalorder %s512_s22, %s787_s0 }
  0x1c   : > { %p520_p5 = scmp.lt.s32.totalorder %s518_s28, %s513_s24 }
  0x1d   : > { %p516_p12 = pnand %p515_p11, %p514_p2 }
  0x1e   : > { %p521_p7 = por %p520_p5, %p519_p0 }
  0x1f   : > { %p517_p13 = pneg %p516_p12 }
  0x21   : > { %p522_p9 = pnand %p521_p7, %p517_p13 }
  0x23   : > { %525 = shalt.err (!%p522_p9)
}
  0x24   : > { %437 = dma.hbm_to_vmem [thread:$0]  (!%p712_p10), %s161_s10, 64, %s163_s17, %s151_s21  }
  0x25   : > { %171 = sbr.rel (%p679_p8) target bundleno = 426 (0x1aa), region = 28  ;;  %s729_s4 = sand.u32 (!%p679_p8), 1, %s603_s13  }
  0x26   : > { %s412_s7 = sshll.u32 (!%p679_p8), %s729_s4, 2  ;;  %s174_s8 = scalar_lea.sflag (!%p679_p8), [#allocation3], %s729_s4 }
  0x27   : > { %s177_s9 = scalar_lea.vmem (!%p679_p8), [#allocation2], %s412_s7 }
  0x2a   : > { %586 = dma.done.wait (%p666_p4), %s174_s8, 64  }
  0x2b   : > { %588 = vsyncadd (%p666_p4), %s174_s8, 4294967232 }
  0x2c   : > { %590 = dma.done.wait (%p42_p1), [#allocation6], 64  }
  0x2d   : > { %592 = vsyncadd (%p42_p1), [#allocation6], 4294967232  ;;  %v214_v0 = vld [vmem:[%s177_s9] sm:$0xf]  ;;  %s614_s23 = smov 127   ;;  %s615_s10 = smov 1   ;;  %v216_v1 = vlaneseq }
  0x2e   : > { %224 = vrot.lane.b32.xlu0 %v214_v0, %s614_s23  ;;  %vm233_vm1 = vcmask 1043456   ;;  %v231_v5 = vrot.slane %v214_v0, 4  ;;  %v215_v8 = vld [vmem:[#allocation5] sm:$0xf]  ;;  %vm235_vm3 = vcmask 97280   ;;  %s419_s18 = sshll.u32 %s657_s16, 2 }
  0x2f   : > { %v217_v2 = vand.u32 127, %v216_v1  ;;  %s293_s20 = scalar_lea.hbm %s789_s2, %s419_s18  ;;  %s203_s21 = scalar_lea.vmem [#allocation7], %s412_s7 }
  0x30   : > { %s295_s22 = sshll.u32 %s203_s21, 4  ;;  %s297_s24 = sshll.u32 %s293_s20, 4  ;;  %s296_s22 = int_to_ptr.vmem [resolvable:$true] %s295_s22  ;;  %s298_s24 = int_to_ptr.hbm [resolvable:$true] %s297_s24 }
  0x31   : > { %vm226_vm0 = vcmp.ge.s32.totalorder %v217_v2, 127  ;;  %vm220_vm2 = vcmp.lt.s32.totalorder %v217_v2, 1  ;;  %vm262_vm4 = vcmp.lt.s32.totalorder %v217_v2, 16  ;;  %s279_s25 = scalar_lea.sflag [#allocation4], %s729_s4  ;;  %s555_s27 = sshra.s32 %s298_s24, 4  ;;  %s556_s27 = int_to_ptr.hbm [resolvable:$true] %s555_s27 }
  0x32   : > { %s557_s28 = scalar_lea.hbm %s556_s27, 4  ;;  %s561_s7 = scalar_lea.hbm %s789_s2, 8 }
  0x33   : > { %p558_p1 = scmp.ne.s32.totalorder %s556_s27, %s557_s28  ;;  %p562_p9 = scmp.lt.s32.totalorder %s556_s27, %s789_s2 }
  0x34   : > { %p563_p10 = scmp.lt.s32.totalorder %s561_s7, %s557_s28 }
  0x35   : > { %p559_p4 = pnand %p558_p1, %p702_p3 }
  0x36   : > { %218 = vrot.lane.b32.xlu0 %v214_v0, %s615_s10  ;;  %p564_p2 = por %p563_p10, %p562_p9 }
  0x37   : > { %p560_p8 = pneg %p559_p4 }
  0x39   : > { %p565_p11 = pnand %p564_p2, %p560_p8 }
  0xa0   : > { %v225_v3 = vpop.permute.xlu0 %224 }
  0xa1   : > { %v229_v4 = vsel %vm226_vm0, 0.0, %v225_v3 }
  0xa2   : > { %416 = vmatpush.msk.msra.mxu0 %vm233_vm1, %v229_v4 }
  0xa8   : > { %v219_v6 = vpop.permute.xlu0 %218 }
  0xa9   : > { %v223_v7 = vsel %vm220_vm2, 0.0, %v219_v6 }
  0xaa   : > { %v234_v9 = vsel %vm233_vm1, %v223_v7, %v231_v5 }
  0xab   : > { %257 = vmatpush.msra.mxu0 %v234_v9 }
  0xac   : > { %417 = vmatmul.msk.f32.vlgmr.msra.gmra.mxu0 %vm235_vm3, %v215_v8 }
 0x129   : > { %v259_v10 = vpop.f32.mrf.mxu0 }
 0x12a   : > { %v265_v11 = vsel %vm262_vm4, %v259_v10, 0.0 }
 0x12b   : > { %266 = vst [vmem:[%s203_s21] sm:$0xf] %v265_v11  ;;  %v267_v12 = vsel %vm233_vm1, %v265_v11, 0.0 }
 0x12c   : > { %268 = vadd.xlane.f32.xlu1 %v267_v12 }
 0x12d   : > { %568 = shalt.err (!%p565_p11)
}
 0x12e   : > { %428 = dma.vmem_to_hbm [thread:$0]  (%p702_p3), %s296_s22, 64, %s298_s24, %s279_s25   ;;  %v270_v13 = vmul.f32 %v265_v11, %v265_v11  ;;  %vm274_vm5 = vcmask 7168   ;;  %vm276_vm6 = vcmask 11264  }
 0x12f   : > { %p210_p12 = scmp.lt.s32.totalorder %s657_s16, 1 }
 0x130   : > { %v271_v14 = vsel %vm233_vm1, %v270_v13, 0.0 }
 0x131   : > { %s802_s16 = smov (!%p210_p12, %s657_s16), 1 }
 0x132   : > { %s415_s4 = sshll.u32 %s802_s16, 2 }
 0x133   : > { %s213_s18 = scalar_lea.vmem %s790_s3, %s415_s4 }
 0x134   : > { %272 = vadd.xlane.f32.xlu1 %v271_v14 }
 0x19f   : > { %v269_v15 = vpop.xlane.xlu1 %268 }
 0x1a7   : > { %v273_v16 = vpop.xlane.xlu1 %272 }
 0x1a8   : > { %v275_v17 = vsel %vm274_vm5, %v269_v15, %v273_v16 }
 0x1a9   : > { %277 = vst.msk [vmem:[%s213_s18] sm:$0xf] %vm276_vm6, %v275_v17 }
 0x1aa PF: > { %s312_s30 = sand.u32 1, %s599_s12   ;;  %p796_p3 = scmp.ge.s32.totalorder %s611_s15, 2 }
 0x1ab   : > { %s313_s11 = scalar_lea.sflag [#allocation4], %s312_s30 }
 0x1ac   : > { %p439_p13 = pnand %p796_p3, %p671_p6 }
 0x1ae   : > { %p440_p0 = pneg %p439_p13 }
 0x1b0   : > { %594 = dma.done.wait (%p440_p0), %s313_s11, 64  }
 0x1b1   : > { %596 = vsyncadd (%p440_p0), %s313_s11, 4294967232  ;;  %p18_p5 = scmp.ge.s32.totalorder %s689_s26, 4   ;;  %s797_s12 = smov %s603_s13 }
 0x1b2   : > { %s798_s13 = smov %s607_s14  ;;  %s799_s14 = smov %s698_s29 }
 0x1b3   : > { %s800_s15 = smov %s689_s26  ;;  %20 = sbr.rel (!%p18_p5) target bundleno = 6 (0x6), region = 89 }
 0x1b8   :  { %326 = vsyncpa [#allocation3], 1 }
 0x1b9   :  { %328 = vsyncpa [#allocation3 + $0x1], 1 }
 0x1ba   :  { %329 = vsyncpa [#allocation6], 1 }
 0x1bb   :  { %330 = vsyncpa [#allocation4], 1 }
 0x1bc   :  { %332 = vsyncpa [#allocation4 + $0x1], 1 }

</bundles_post_ra>
